<compile_context>
chip_gen: v5e
topology: v5e:2x2
jax: 0.10.0
libtpu: 0.0.40
codegen_flags: <defaults>
</compile_context>

<pallas_src>
import functools
import math

import jax
import jax.numpy as jnp
import numpy as np
from jax.experimental import pallas as pl
from jax.experimental.pallas import tpu as pltpu

_LANES = 128


def _class_log_loss_kernel(logits_ref, target_ref, out_ref, acc_ref, *,
                           b, hw, r_tile, tiles_per_split, n_tiles,
                           may_mask, may_skip):
    s = pl.program_id(0)          # TensorCore split (size 1 on v5e/v6e)
    i = pl.program_id(1)          # spatial tile within the split

    @pl.when(i == 0)
    def _():
        acc_ref[...] = jnp.zeros_like(acc_ref)

    C = logits_ref.shape[0]

    # Streaming argmax over the leading channel axis (first-occurrence ties):
    # only two (r_tile, 128) live temporaries, ~3 VPU passes per channel.
    best_val = logits_ref[0]
    best_idx = jnp.zeros((r_tile, _LANES), jnp.int32)
    for c in range(1, C):
        v = logits_ref[c]
        upd = v > best_val
        best_val = jnp.where(upd, v, best_val)
        best_idx = jnp.where(upd, jnp.int32(c), best_idx)

    # |pred - t| in f32 (exact for label-sized ints, no int-overflow surprises
    # on garbage OOB data in the masked tail).
    diff = jnp.abs(best_idx.astype(jnp.float32) -
                   target_ref[...].astype(jnp.float32))
    scale = jnp.float32(4.0 / math.log(4.0 * b + 1.0))        # static constant
    elems = jnp.log(jnp.float32(b) * diff + 1.0) * scale + 1.0

    tile = s * tiles_per_split + i
    tile_start = tile * (r_tile * _LANES)

    def accumulate(masked):
        e = elems
        if masked:   # static flag: only generated for the tail branch
            row = jax.lax.broadcasted_iota(jnp.int32, (r_tile, _LANES), 0)
            lane = jax.lax.broadcasted_iota(jnp.int32, (r_tile, _LANES), 1)
            flat = tile_start + row * _LANES + lane
            e = jnp.where(flat < hw, elems, 0.0)
        # Dense (r_tile,128) -> (8,128) VPU reduction into the resident scratch;
        # the single cross-lane XLU reduce happens once per split at the end.
        acc_ref[...] += jnp.sum(e.reshape(r_tile // 8, 8, _LANES), axis=0)

    valid = tile < n_tiles              # only False for the v7x duplicate tile
    if may_mask:
        is_tail = (tile_start + r_tile * _LANES) > hw
        if may_skip:
            plain = jnp.logical_and(valid, jnp.logical_not(is_tail))
            tail = jnp.logical_and(valid, is_tail)
        else:
            plain = jnp.logical_not(is_tail)
            tail = is_tail
        pl.when(plain)(lambda: accumulate(False))
        pl.when(tail)(lambda: accumulate(True))
    elif may_skip:
        pl.when(valid)(lambda: accumulate(False))
    else:
        accumulate(False)

    @pl.when(i == pl.num_programs(1) - 1)
    def _():
        out_ref[0, 0] = jnp.sum(acc_ref[...])                 # partial sum


def _tpu_config():
    try:
        kind = jax.devices()[0].device_kind.lower()
    except Exception:
        kind = ""
    is_v7 = "7" in kind   # 2 TensorCores, 64 MiB VMEM per core
    return dict(
        num_splits=2 if is_v7 else 1,
        tile_budget_bytes=(4 if is_v7 else 12) * 1024 * 1024,
        row_cap=1024 if is_v7 else 2048,
        vmem_limit_bytes=(32 if is_v7 else 64) * 1024 * 1024,
    )


def class_log_loss(inputs, target, b=10):
    """inputs: (1, C, H, W) float logits (NCHW); target: (1, H, W) int labels."""
    N, C, H, W = inputs.shape
    assert N == 1 and target.shape == (1, H, W), (
        f"predict {inputs.shape} & target {target.shape} shape do not match")
    hw = H * W
    cfg = _tpu_config()
    num_splits = cfg["num_splits"]
    itemsize = jnp.dtype(inputs.dtype).itemsize

    # Rows of 128 lanes, rounded only to a multiple of 8 (never to
    # r_tile * num_splits).  When hw is already 8*128-aligned there is no pad
    # and therefore no extra HBM pass at all.
    rows_total = ((pl.cdiv(hw, _LANES) + 7) // 8) * 8

    # Largest row tile that keeps the double-buffered logits block within the
    # per-generation budget.  Multiple of 32 whenever the row axis is tiled so
    # bf16/int8 logits blocks satisfy the sublane tiling constraint too.
    max_rows = cfg["tile_budget_bytes"] // max(C * _LANES * itemsize, 1)
    max_rows = max(32, min(cfg["row_cap"], (max_rows // 32) * 32))
    r_tile = rows_total if rows_total <= max_rows else max_rows

    n_tiles = pl.cdiv(rows_total, r_tile)
    tiles_per_split = pl.cdiv(n_tiles, num_splits)
    may_skip = num_splits * tiles_per_split != n_tiles       # v7x odd split
    may_mask = (rows_total % r_tile != 0) or (rows_total * _LANES != hw)

    pad = rows_total * _LANES - hw
    logits = inputs.reshape(C, hw)          # native dtype, contiguous reshape
    tgt = target.reshape(hw).astype(jnp.int32)
    if pad:                                  # <= 8*128-1 elements per channel
        logits = jnp.pad(logits, ((0, 0), (0, pad)))
        tgt = jnp.pad(tgt, (0, pad))
    logits = logits.reshape(C, rows_total, _LANES)
    tgt = tgt.reshape(rows_total, _LANES)

    kernel = functools.partial(
        _class_log_loss_kernel, b=b, hw=hw, r_tile=r_tile,
        tiles_per_split=tiles_per_split, n_tiles=n_tiles,
        may_mask=may_mask, may_skip=may_skip)

    cost = pl.CostEstimate(
        flops=hw * (3 * C + 8),
        transcendentals=hw,
        bytes_accessed=C * hw * itemsize + hw * 4 + 4 * num_splits)

    def row_idx(s, i):
        # Clamped tile index: the v7x duplicate maps to the last real tile and
        # is skipped inside the kernel (no data padding to an even split).
        return jnp.minimum(s * tiles_per_split + i, n_tiles - 1)

    partial_sums = pl.pallas_call(
        kernel,
        out_shape=jax.ShapeDtypeStruct((num_splits, 1), jnp.float32),
        grid_spec=pltpu.PrefetchScalarGridSpec(
            num_scalar_prefetch=0,
            grid=(num_splits, tiles_per_split),
            in_specs=[
                pl.BlockSpec((C, r_tile, _LANES),
                             lambda s, i: (0, row_idx(s, i), 0)),
                pl.BlockSpec((r_tile, _LANES),
                             lambda s, i: (row_idx(s, i), 0)),
            ],
            out_specs=pl.BlockSpec((1, 1), lambda s, i: (s, 0),
                                   memory_space=pltpu.MemorySpace.SMEM),
            scratch_shapes=[pltpu.VMEM((8, _LANES), jnp.float32)],
        ),
        compiler_params=pltpu.CompilerParams(
            dimension_semantics=("parallel", "arbitrary"),
            vmem_limit_bytes=cfg["vmem_limit_bytes"]),
        cost_estimate=cost,
    )(logits, tgt)

    return jnp.sum(partial_sums) / jnp.float32(hw)


def _reference(inputs, target, b=10):
    # Pure-JAX reference mirroring the PyTorch forward.
    pred = jnp.argmax(inputs, axis=1)[0].astype(jnp.float32)
    tgt = target[0].astype(jnp.float32)
    return jnp.mean(
        4.0 * jnp.log(b * jnp.abs(pred - tgt) + 1.0) / np.log(4.0 * b + 1.0) + 1.0)


if __name__ == "__main__":
    key = jax.random.PRNGKey(0)
    k1, k2, k3, k4 = jax.random.split(key, 4)

    # Case 1: small, lane-aligned spatial extent.
    inputs = jax.random.normal(k1, (1, 4, 16, 16), dtype=jnp.float32)
    target = jax.random.randint(k2, (1, 16, 16), 0, 4, dtype=jnp.int32)
    loss = jax.block_until_ready(class_log_loss(inputs, target, b=10))
    ref = _reference(inputs, target, b=10)
    assert np.allclose(np.asarray(loss), np.asarray(ref), rtol=1e-5, atol=1e-5), (
        float(loss), float(ref))

    # Case 2: ragged spatial extent (exercises OOB tail masking + grid).
    inputs2 = jax.random.normal(k3, (1, 5, 33, 45), dtype=jnp.float32)
    target2 = jax.random.randint(k4, (1, 33, 45), 0, 5, dtype=jnp.int32)
    loss2 = jax.block_until_ready(class_log_loss(inputs2, target2, b=10))
    ref2 = _reference(inputs2, target2, b=10)
    assert np.allclose(np.asarray(loss2), np.asarray(ref2), rtol=1e-5, atol=1e-5), (
        float(loss2), float(ref2))

    print("KERNEL_OK")
</pallas_src>

<mosaic_0001>
module attributes {stable_mosaic.version = 11 : i64} {
  func.func @_class_log_loss_kernel(%arg0: i32, %arg1: i32, %arg2: memref<4x8x128xf32, #tpu.memory_space<vmem>>, %arg3: memref<8x128xi32, #tpu.memory_space<vmem>>, %arg4: memref<1x1xf32, #tpu.memory_space<smem>>, %arg5: memref<8x128xf32, #tpu.memory_space<vmem>>) attributes {dimension_semantics = [#tpu.dimension_semantics<parallel>, #tpu.dimension_semantics<arbitrary>], iteration_bounds = array<i64: 1, 1>, scalar_prefetch = 0 : i64, scratch_operands = 1 : i64, tpu.core_type = #tpu.core_type<tc>, window_params = [{transform_indices = @transform_0, window_bounds = array<i64: 4, 8, 128>}, {transform_indices = @transform_1, window_bounds = array<i64: 8, 128>}, {transform_indices = @transform_2, window_bounds = array<i64: 1, 1>}]} {
    %c0_i32 = arith.constant 0 : i32
    %0 = arith.cmpi eq, %arg1, %c0_i32 : i32
    %1 = arith.extui %0 : i1 to i32
    %c0_i32_0 = arith.constant 0 : i32
    %2 = arith.cmpi ne, %1, %c0_i32_0 : i32
    scf.if %2 {
      %cst_21 = arith.constant 0.000000e+00 : f32
      %50 = vector.broadcast %cst_21 : f32 to vector<8x128xf32>
      %c0_22 = arith.constant 0 : index
      %c0_23 = arith.constant 0 : index
      %51 = vector.load %arg5[%c0_22, %c0_23] : memref<8x128xf32, #tpu.memory_space<vmem>>, vector<8x128xf32>
      tpu.vector_store %arg5[%c0_22, %c0_23], %50 {strides = array<i32>} : memref<8x128xf32, #tpu.memory_space<vmem>>, vector<8x128xf32>,
    } else {
    }
    %c0 = arith.constant 0 : index
    %c0_1 = arith.constant 0 : index
    %c0_2 = arith.constant 0 : index
    %3 = vector.load %arg2[%c0, %c0_1, %c0_2] : memref<4x8x128xf32, #tpu.memory_space<vmem>>, vector<1x8x128xf32>
    %4 = vector.shape_cast %3 : vector<1x8x128xf32> to vector<8x128xf32>
    %c0_i32_3 = arith.constant 0 : i32
    %5 = vector.broadcast %c0_i32_3 : i32 to vector<8x128xi32>
    %c1 = arith.constant 1 : index
    %c0_4 = arith.constant 0 : index
    %c0_5 = arith.constant 0 : index
    %6 = vector.load %arg2[%c1, %c0_4, %c0_5] : memref<4x8x128xf32, #tpu.memory_space<vmem>>, vector<1x8x128xf32>
    %7 = vector.shape_cast %6 : vector<1x8x128xf32> to vector<8x128xf32>
    %8 = arith.cmpf ogt, %7, %4 : vector<8x128xf32>
    %9 = arith.select %8, %7, %4 : vector<8x128xi1>, vector<8x128xf32>
    %c1_i32 = arith.constant 1 : i32
    %10 = vector.broadcast %c1_i32 : i32 to vector<8x128xi32>
    %11 = arith.select %8, %10, %5 : vector<8x128xi1>, vector<8x128xi32>
    %c2 = arith.constant 2 : index
    %c0_6 = arith.constant 0 : index
    %c0_7 = arith.constant 0 : index
    %12 = vector.load %arg2[%c2, %c0_6, %c0_7] : memref<4x8x128xf32, #tpu.memory_space<vmem>>, vector<1x8x128xf32>
    %13 = vector.shape_cast %12 : vector<1x8x128xf32> to vector<8x128xf32>
    %14 = arith.cmpf ogt, %13, %9 : vector<8x128xf32>
    %15 = arith.select %14, %13, %9 : vector<8x128xi1>, vector<8x128xf32>
    %c2_i32 = arith.constant 2 : i32
    %16 = vector.broadcast %c2_i32 : i32 to vector<8x128xi32>
    %17 = arith.select %14, %16, %11 : vector<8x128xi1>, vector<8x128xi32>
    %c3 = arith.constant 3 : index
    %c0_8 = arith.constant 0 : index
    %c0_9 = arith.constant 0 : index
    %18 = vector.load %arg2[%c3, %c0_8, %c0_9] : memref<4x8x128xf32, #tpu.memory_space<vmem>>, vector<1x8x128xf32>
    %19 = vector.shape_cast %18 : vector<1x8x128xf32> to vector<8x128xf32>
    %20 = arith.cmpf ogt, %19, %15 : vector<8x128xf32>
    %c3_i32 = arith.constant 3 : i32
    %21 = vector.broadcast %c3_i32 : i32 to vector<8x128xi32>
    %22 = arith.select %20, %21, %17 : vector<8x128xi1>, vector<8x128xi32>
    %23 = arith.sitofp %22 : vector<8x128xi32> to vector<8x128xf32>
    %c0_10 = arith.constant 0 : index
    %c0_11 = arith.constant 0 : index
    %24 = vector.load %arg3[%c0_10, %c0_11] : memref<8x128xi32, #tpu.memory_space<vmem>>, vector<8x128xi32>
    %25 = arith.sitofp %24 : vector<8x128xi32> to vector<8x128xf32>
    %26 = arith.subf %23, %25 : vector<8x128xf32>
    %27 = math.absf %26 : vector<8x128xf32>
    %cst = arith.constant 1.000000e+01 : f32
    %28 = vector.broadcast %cst : f32 to vector<8x128xf32>
    %29 = arith.mulf %28, %27 : vector<8x128xf32>
    %cst_12 = arith.constant 1.000000e+00 : f32
    %30 = vector.broadcast %cst_12 : f32 to vector<8x128xf32>
    %31 = arith.addf %29, %30 : vector<8x128xf32>
    %32 = math.log %31 : vector<8x128xf32>
    %cst_13 = arith.constant 1.07713008 : f32
    %33 = vector.broadcast %cst_13 : f32 to vector<8x128xf32>
    %34 = arith.mulf %32, %33 : vector<8x128xf32>
    %cst_14 = arith.constant 1.000000e+00 : f32
    %35 = vector.broadcast %cst_14 : f32 to vector<8x128xf32>
    %36 = arith.addf %34, %35 : vector<8x128xf32>
    %c1_i32_15 = arith.constant 1 : i32
    %37 = arith.muli %arg0, %c1_i32_15 : i32
    %38 = arith.addi %37, %arg1 : i32
    %c1024_i32 = arith.constant 1024 : i32
    %39 = arith.muli %38, %c1024_i32 : i32
    %c1024_i32_16 = arith.constant 1024 : i32
    %40 = arith.addi %39, %c1024_i32_16 : i32
    %c256_i32 = arith.constant 256 : i32
    %41 = arith.cmpi sgt, %40, %c256_i32 : i32
    %true = arith.constant true
    %42 = arith.xori %41, %true : i1
    %43 = arith.extui %42 : i1 to i32
    %c0_i32_17 = arith.constant 0 : i32
    %44 = arith.cmpi ne, %43, %c0_i32_17 : i32
    scf.if %44 {
      %c0_21 = arith.constant 0 : index
      %c0_22 = arith.constant 0 : index
      %50 = vector.load %arg5[%c0_21, %c0_22] : memref<8x128xf32, #tpu.memory_space<vmem>>, vector<8x128xf32>
      %51 = vector.shape_cast %36 : vector<8x128xf32> to vector<1x8x128xf32>
      %cst_23 = arith.constant dense<0.000000e+00> : vector<8x128xf32>
      %52 = vector.multi_reduction <add>, %51, %cst_23 [0] : vector<1x8x128xf32> to vector<8x128xf32>
      %53 = arith.addf %50, %52 : vector<8x128xf32>
      %c0_24 = arith.constant 0 : index
      %c0_25 = arith.constant 0 : index
      %54 = vector.load %arg5[%c0_24, %c0_25] : memref<8x128xf32, #tpu.memory_space<vmem>>, vector<8x128xf32>
      tpu.vector_store %arg5[%c0_24, %c0_25], %53 {strides = array<i32>} : memref<8x128xf32, #tpu.memory_space<vmem>>, vector<8x128xf32>,
    } else {
    }
    %45 = arith.extui %41 : i1 to i32
    %c0_i32_18 = arith.constant 0 : i32
    %46 = arith.cmpi ne, %45, %c0_i32_18 : i32
    scf.if %46 {
      %50 = tpu.iota {dimensions = array<i32: 0>} : vector<8x128xi32>
      %51 = tpu.iota {dimensions = array<i32: 1>} : vector<8x128xi32>
      %c128_i32 = arith.constant 128 : i32
      %52 = vector.broadcast %c128_i32 : i32 to vector<8x128xi32>
      %53 = arith.muli %50, %52 : vector<8x128xi32>
      %54 = vector.broadcast %39 : i32 to vector<8x128xi32>
      %55 = arith.addi %54, %53 : vector<8x128xi32>
      %56 = arith.addi %55, %51 : vector<8x128xi32>
      %c256_i32_21 = arith.constant 256 : i32
      %57 = vector.broadcast %c256_i32_21 : i32 to vector<8x128xi32>
      %58 = arith.cmpi slt, %56, %57 : vector<8x128xi32>
      %cst_22 = arith.constant 0.000000e+00 : f32
      %59 = vector.broadcast %cst_22 : f32 to vector<8x128xf32>
      %60 = arith.select %58, %36, %59 : vector<8x128xi1>, vector<8x128xf32>
      %c0_23 = arith.constant 0 : index
      %c0_24 = arith.constant 0 : index
      %61 = vector.load %arg5[%c0_23, %c0_24] : memref<8x128xf32, #tpu.memory_space<vmem>>, vector<8x128xf32>
      %62 = vector.shape_cast %60 : vector<8x128xf32> to vector<1x8x128xf32>
      %cst_25 = arith.constant dense<0.000000e+00> : vector<8x128xf32>
      %63 = vector.multi_reduction <add>, %62, %cst_25 [0] : vector<1x8x128xf32> to vector<8x128xf32>
      %64 = arith.addf %61, %63 : vector<8x128xf32>
      %c0_26 = arith.constant 0 : index
      %c0_27 = arith.constant 0 : index
      %65 = vector.load %arg5[%c0_26, %c0_27] : memref<8x128xf32, #tpu.memory_space<vmem>>, vector<8x128xf32>
      tpu.vector_store %arg5[%c0_26, %c0_27], %64 {strides = array<i32>} : memref<8x128xf32, #tpu.memory_space<vmem>>, vector<8x128xf32>,
    } else {
    }
    %c0_i32_19 = arith.constant 0 : i32
    %47 = arith.cmpi eq, %arg1, %c0_i32_19 : i32
    %48 = arith.extui %47 : i1 to i32
    %c0_i32_20 = arith.constant 0 : i32
    %49 = arith.cmpi ne, %48, %c0_i32_20 : i32
    scf.if %49 {
      %c0_21 = arith.constant 0 : index
      %c0_22 = arith.constant 0 : index
      %50 = vector.load %arg5[%c0_21, %c0_22] : memref<8x128xf32, #tpu.memory_space<vmem>>, vector<8x128xf32>
      %51 = vector.shape_cast %50 : vector<8x128xf32> to vector<1x8x128xf32>
      %cst_23 = arith.constant dense<0.000000e+00> : vector<1xf32>
      %52 = vector.multi_reduction <add>, %51, %cst_23 [1, 2] : vector<1x8x128xf32> to vector<1xf32>
      %53 = vector.shape_cast %52 : vector<1xf32> to vector<1x1x1xf32>
      %54 = vector.extract %53[0, 0, 0] : f32 from vector<1x1x1xf32>
      %c0_24 = arith.constant 0 : index
      %c0_25 = arith.constant 0 : index
      %55 = memref.load %arg4[%c0_24, %c0_25] : memref<1x1xf32, #tpu.memory_space<smem>>
      memref.store %54, %arg4[%c0_24, %c0_25] : memref<1x1xf32, #tpu.memory_space<smem>>
    } else {
    }
    return
  }
  func.func @transform_0(%arg0: i32, %arg1: i32) -> (i32, i32, i32) {
    %c1_i32 = arith.constant 1 : i32
    %0 = arith.muli %arg0, %c1_i32 : i32
    %1 = arith.addi %0, %arg1 : i32
    %c0_i32 = arith.constant 0 : i32
    %2 = arith.minsi %1, %c0_i32 : i32
    %c0_i32_0 = arith.constant 0 : i32
    %c0_i32_1 = arith.constant 0 : i32
    %c0_i32_2 = arith.constant 0 : i32
    return %c0_i32_0, %2, %c0_i32_1 : i32, i32, i32
  }
  func.func @transform_1(%arg0: i32, %arg1: i32) -> (i32, i32) {
    %c1_i32 = arith.constant 1 : i32
    %0 = arith.muli %arg0, %c1_i32 : i32
    %1 = arith.addi %0, %arg1 : i32
    %c0_i32 = arith.constant 0 : i32
    %2 = arith.minsi %1, %c0_i32 : i32
    %c0_i32_0 = arith.constant 0 : i32
    %c0_i32_1 = arith.constant 0 : i32
    return %2, %c0_i32_0 : i32, i32
  }
  func.func @transform_2(%arg0: i32, %arg1: i32) -> (i32, i32) {
    %c0_i32 = arith.constant 0 : i32
    %c0_i32_0 = arith.constant 0 : i32
    return %arg0, %c0_i32 : i32, i32
  }
}

</mosaic_0001>

<bundles_post_ra>
// kernel: tpu_custom_call.1
= control target key start
LH: loop header
LB: loop body
LE: loop exit
PB: predicated region body
PF: predicated region fallthrough
CT: control target
= control target key end

     0   :  { %7 = vsyncpa [#allocation4], 0  ;;  %s260_s0 = inlined_call_operand.hbm [shape: f32[4,8,128], index: 0, kind: input, shape index: {}]   ;;  %s261_s1 = inlined_call_operand.hbm [shape: s32[8,128], index: 1, kind: input, shape index: {}]   ;;  %s262_s2 = inlined_call_operand.hbm [shape: f32[1,1], index: 2, kind: output, shape index: {}]  }
   0x1   :  { %8 = vsyncpa [#allocation7], 0 }
   0x2   :  { %9 = vsyncpa [#allocation5], 0  ;;  %s19_s11 = sshll.u32 %s260_s0, 4  ;;  %s230_s12 = smov [#allocation3]   ;;  %s20_s11 = int_to_ptr.hbm [resolvable:$true] %s19_s11 }
   0x3   :  { %s21_s13 = sshll.u32 %s230_s12, 4  ;;  %s38_s16 = sshll.u32 %s261_s1, 4  ;;  %s22_s13 = int_to_ptr.vmem [resolvable:$true] %s21_s13  ;;  %s39_s16 = int_to_ptr.hbm [resolvable:$true] %s38_s16 }
   0x4   :  { %s231_s17 = smov 128   ;;  %s232_s18 = smov 8  }
   0x5   :  { %27 = dma.hbm_to_vmem [thread:$0]  %s20_s11, 512, %s22_s13, [#allocation4], %s231_s17, %s231_s17, %s232_s18  }
   0x6   :  { %s233_s19 = smov [#allocation6]  }
   0x7   :  { %s40_s20 = sshll.u32 %s233_s19, 4  ;;  %s41_s20 = int_to_ptr.vmem [resolvable:$true] %s40_s20 }
   0x8   :  { %43 = dma.hbm_to_vmem [thread:$0]  %s39_s16, 128, %s41_s20, [#allocation7]  }
   0x9   :  { %224 = dma.done.wait [#allocation4], 512  }
   0xa   :  { %225 = vsyncadd [#allocation4], 4294966784 }
   0xb   :  { %226 = dma.done.wait [#allocation7], 128  }
   0xc   :  { %227 = vsyncadd [#allocation7], 4294967168  ;;  %v63_v0 = vld [vmem:[#allocation3] sm:$0xff]  ;;  %v65_v1 = vld [vmem:[#allocation3 + $0x8] sm:$0xff]  ;;  %v234_v4 = vmov 0   ;;  %v104_v15 = vlaneseq  ;;  %s138_s21 = sshll.u32 %s262_s2, 4  ;;  %s139_s21 = int_to_ptr.hbm [resolvable:$true] %s138_s21 }
   0xd   :  { %v70_v2 = vld [vmem:[#allocation3 + $0x10] sm:$0xff]  ;;  %vm66_vm0 = vcmp.gt.f32.partialorder %v65_v1, %v63_v0  ;;  %v75_v6 = vld [vmem:[#allocation3 + $0x18] sm:$0xff]  ;;  %v79_v7 = vld [vmem:[#allocation6] sm:$0xff]  ;;  %s235_s23 = smov [#allocation8]  }
   0xe   :  { %v67_v3 = vsel %vm66_vm0, %v65_v1, %v63_v0  ;;  %v68_v5 = vsel %vm66_vm0, 1, %v234_v4  ;;  %v80_v10 = vcvt.s32.f32 %v79_v7  ;;  %v105_v18 = vshrl.u32 %v104_v15, 7 }
   0xf   :  { %vm71_vm1 = vcmp.gt.f32.partialorder %v70_v2, %v67_v3  ;;  %v107_v19 = vand.u32 127, %v104_v15 }
  0x10   :  { %v72_v8 = vsel %vm71_vm1, %v70_v2, %v67_v3  ;;  %v73_v9 = vsel %vm71_vm1, 2, %v68_v5  ;;  %v108_v20 = vmul.u32 128, %v105_v18 }
  0x11   :  { %vm76_vm2 = vcmp.gt.f32.partialorder %v75_v6, %v72_v8 }
  0x12   :  { %v77_v11 = vsel %vm76_vm2, 3, %v73_v9  ;;  %v111_v22 = vadd.s32 %v108_v20, %v107_v19 }
  0x13   :  { %v78_v12 = vcvt.s32.f32 %v77_v11 }
  0x14   :  { %vm112_vm3 = vcmp.lt.s32.totalorder %v111_v22, 256 }
  0x15   :  { %v81_v13 = vsub.f32 %v78_v12, %v80_v10 }
  0x17   :  { %v82_v14 = vand.u32 2147483647, %v81_v13 }
  0x19   :  { %v83_v16 = vmul.f32 10.0, %v82_v14 }
  0x1b   :  { %v84_v17 = vadd.f32 1.0, %v83_v16 }
  0x1d   :  { %162 = vlog2.f32 %v84_v17 }
  0x23   :  { %v163_v21 = vpop.eup %162 }
  0x24   :  { %v86_v23 = vmul.f32 0.6931472, %v163_v21 }
  0x26   :  { %v87_v24 = vmul.f32 1.0771301, %v86_v23 }
  0x28   :  { %v88_v25 = vadd.f32 1.0, %v87_v24 }
  0x2a   :  { %v113_v26 = vsel %vm112_vm3, %v88_v25, 0.0 }
  0x2b   :  { %122 = vadd.xlane.f32.xlu0 %v113_v26 }
  0x9e   :  { %v123_v27 = vpop.xlane.xlu0 %122 }
  0x9f   :  { %v124_v28 = vrot.slane %v123_v27, 4 }
  0xa1   :  { %v125_v29 = vadd.f32 %v124_v28, %v123_v27 }
  0xa3   :  { %v126_v30 = vrot.slane %v125_v29, 2 }
  0xa5   :  { %v127_v31 = vadd.f32 %v126_v30, %v125_v29 }
  0xa7   :  { %v128_v32 = vrot.slane %v127_v31, 1 }
  0xa9   :  { %v129_v33 = vadd.f32 %v128_v32, %v127_v31 }
  0xab   :  { %154 = vpush %v129_v33 }
  0xdc   :  { %s155_s22 = spop %154 }
  0xdd   :  { %132 = sst [smem:[#allocation8]] %s155_s22 }
  0xde   :  { %141 = dma.smem_to_hbm %s235_s23, 16, %s139_s21, [#allocation5]  }
  0xdf   :  { %228 = dma.done.wait [#allocation5], 16  }
  0xe0   :  { %229 = vsyncadd [#allocation5], 4294967280 }
  0xe1   :  { %146 = sfence }
  0xe2   :  { %147 = vsyncpa [#allocation4], 1 }
  0xe3   :  { %148 = vsyncpa [#allocation7], 1 }
  0xe4   :  { %149 = vsyncpa [#allocation5], 1 }

</bundles_post_ra>
